<compile_context>
chip_gen: v7x
topology: tpu7x:2x2x1
jax: 0.10.0
libtpu: 0.0.40
codegen_flags: <defaults>
</compile_context>

<pallas_src>
import functools
import math

import jax
import jax.numpy as jnp
from jax.experimental import pallas as pl
from jax.experimental.pallas import tpu as pltpu


def _gelu_new(x):
    # HuggingFace ACT2FN['gelu_new'] (tanh approximation), kept in f32.
    c = math.sqrt(2.0 / math.pi)
    x3 = x * x * x  # two VPU multiplies; avoid pow expansion
    return 0.5 * x * (1.0 + jnp.tanh(c * (x + 0.044715 * x3)))


def _ffn_kernel(x_ref, w01_ref, wo_ref, o_ref, acc_ref, *, tf):
    """One (tm, d_model) row tile x one tf-chunk of the d_ff reduction axis."""
    k = pl.program_id(1)

    @pl.when(k == 0)
    def _():
        acc_ref[...] = jnp.zeros_like(acc_ref)

    x = x_ref[...]                                               # (tm, d_model)
    # Fused gate+linear projection: a single MXU pass over (d_model, 2*tf).
    gl = jnp.dot(x, w01_ref[...], preferred_element_type=jnp.float32)  # (tm, 2*tf)
    g = gl[:, :tf]                                               # gate half
    l = gl[:, tf:]                                               # linear half
    h = _gelu_new(g) * l                                         # (tm, tf), f32
    # Partial output projection for this d_ff chunk; accumulate in f32.
    acc_ref[...] += jnp.dot(h.astype(wo_ref.dtype), wo_ref[...],
                            preferred_element_type=jnp.float32)  # (tm, d_model)

    @pl.when(k == pl.num_programs(1) - 1)
    def _():
        o_ref[...] = acc_ref[...].astype(o_ref.dtype)


def _round_up(x, m):
    return ((x + m - 1) // m) * m


def _vmem_estimate(tm, tf, d_model, xb, wb):
    return (
        2 * tm * d_model * xb            # x tile (double-buffered)
        + 2 * d_model * 2 * tf * wb      # fused wi tile (double-buffered)
        + 2 * tf * d_model * wb          # wo tile (double-buffered)
        + 2 * tm * d_model * xb          # output tile (double-buffered)
        + tm * d_model * 4               # f32 accumulator scratch
        + tm * 2 * tf * 4                # f32 gate/linear intermediate
    )


def t5_dense_gated_act_dense(hidden_states, wi_0, wi_1, wo, *, tm=256, tf=512,
                             param_dtype=None):
    """T5 v1.1 gated FFN.

    hidden_states: (B, S, d_model)
    wi_0, wi_1:    (d_model, d_ff)   (pre-transposed nn.Linear weights)
    wo:            (d_ff, d_model)
    """
    B, S, d_model = hidden_states.shape
    d_ff = wi_0.shape[1]
    M = B * S

    if param_dtype is not None:
        wi_0 = wi_0.astype(param_dtype)
        wi_1 = wi_1.astype(param_dtype)
        wo = wo.astype(param_dtype)

    xb = jnp.dtype(hidden_states.dtype).itemsize
    wb = jnp.dtype(wi_0.dtype).itemsize

    # --- tile selection ------------------------------------------------------
    tm_eff = min(tm, _round_up(M, 8))
    M_pad = _round_up(M, tm_eff)

    if d_ff <= tf:
        tf_eff = d_ff                      # single reduction step, full-dim blocks
    else:
        tf_eff = _round_up(tf, 128)        # lane-aligned d_ff chunk
        # Shrink the d_ff chunk if the working set would blow past ~48 MiB
        # (keeps the kernel safe on v7x's 64 MiB VMEM for large d_model).
        while (tf_eff > 256
               and _vmem_estimate(tm_eff, tf_eff, d_model, xb, wb) > (48 << 20)):
            tf_eff //= 2
    d_ff_pad = _round_up(d_ff, tf_eff)
    nk = d_ff_pad // tf_eff

    # --- pad to tile multiples (zero padding contributes nothing) -------------
    x2d = hidden_states.reshape(M, d_model)
    if M_pad != M:
        x2d = jnp.pad(x2d, ((0, M_pad - M), (0, 0)))
    if d_ff_pad != d_ff:
        pad_f = d_ff_pad - d_ff
        wi_0 = jnp.pad(wi_0, ((0, 0), (0, pad_f)))
        wi_1 = jnp.pad(wi_1, ((0, 0), (0, pad_f)))
        wo = jnp.pad(wo, ((0, pad_f), (0, 0)))

    # Fuse the two input projections: chunk k of the fused weight holds
    # [wi_0[:, k*tf:(k+1)*tf] | wi_1[:, k*tf:(k+1)*tf]] contiguously.
    w01 = jnp.concatenate(
        [wi_0.reshape(d_model, nk, tf_eff), wi_1.reshape(d_model, nk, tf_eff)],
        axis=2,
    ).reshape(d_model, nk * 2 * tf_eff)

    # --- VMEM budget / scheduling hints ---------------------------------------
    vmem_bytes = _vmem_estimate(tm_eff, tf_eff, d_model, xb, wb)
    vmem_limit = min(int(vmem_bytes * 1.5) + (4 << 20), 64 << 20)

    cost = pl.CostEstimate(
        flops=int(6 * M * d_model * d_ff),           # 2 wide proj + 1 out proj
        transcendentals=int(M * d_ff),               # tanh per gate element
        bytes_accessed=int(x2d.size * xb + w01.size * wb + wo.size * wb
                           + M * d_model * xb),
    )

    kernel = functools.partial(_ffn_kernel, tf=tf_eff)

    out2d = pl.pallas_call(
        kernel,
        out_shape=jax.ShapeDtypeStruct((M_pad, d_model), hidden_states.dtype),
        grid_spec=pltpu.PrefetchScalarGridSpec(
            num_scalar_prefetch=0,
            grid=(M_pad // tm_eff, nk),              # rows parallel, d_ff reduction
            in_specs=[
                pl.BlockSpec((tm_eff, d_model), lambda i, k: (i, 0)),      # x
                pl.BlockSpec((d_model, 2 * tf_eff), lambda i, k: (0, k)),  # [Wi0|Wi1]
                pl.BlockSpec((tf_eff, d_model), lambda i, k: (k, 0)),      # Wo
            ],
            out_specs=pl.BlockSpec((tm_eff, d_model), lambda i, k: (i, 0)),
            scratch_shapes=[pltpu.VMEM((tm_eff, d_model), jnp.float32)],
        ),
        compiler_params=pltpu.CompilerParams(
            dimension_semantics=("parallel", "arbitrary"),
            vmem_limit_bytes=vmem_limit,
        ),
        cost_estimate=cost,
    )(x2d, w01, wo)

    return out2d[:M].reshape(B, S, d_model)


def _reference(hidden_states, wi_0, wi_1, wo):
    g = _gelu_new(jnp.einsum("bsd,df->bsf", hidden_states, wi_0))
    l = jnp.einsum("bsd,df->bsf", hidden_states, wi_1)
    return jnp.einsum("bsf,fd->bsd", g * l, wo)


def _make_inputs(key, B, S, d_model, d_ff, dtype=jnp.float32):
    kx, k0, k1, k2 = jax.random.split(key, 4)
    x = jax.random.normal(kx, (B, S, d_model), dtype=dtype)
    wi_0 = jax.random.normal(k0, (d_model, d_ff), dtype=dtype) / math.sqrt(d_model)
    wi_1 = jax.random.normal(k1, (d_model, d_ff), dtype=dtype) / math.sqrt(d_model)
    wo = jax.random.normal(k2, (d_ff, d_model), dtype=dtype) / math.sqrt(d_ff)
    return x, wi_0, wi_1, wo


if __name__ == "__main__":
    key = jax.random.PRNGKey(0)

    # --- Test 1: small T5-like config, f32, single d_ff chunk -----------------
    x, wi_0, wi_1, wo = _make_inputs(key, B=2, S=8, d_model=32, d_ff=64)
    out = jax.block_until_ready(t5_dense_gated_act_dense(x, wi_0, wi_1, wo))
    ref = _reference(x, wi_0, wi_1, wo)
    assert out.shape == x.shape
    assert jnp.allclose(out, ref, atol=2e-4, rtol=2e-4), "mismatch (test 1)"

    # --- Test 2: non-divisible M, padded d_ff, multi-chunk reduction (nk>1) ---
    x2, w0b, w1b, wob = _make_inputs(jax.random.PRNGKey(1),
                                     B=2, S=7, d_model=32, d_ff=192)
    out2 = jax.block_until_ready(
        t5_dense_gated_act_dense(x2, w0b, w1b, wob, tm=16, tf=128))
    ref2 = _reference(x2, w0b, w1b, wob)
    assert out2.shape == x2.shape
    assert jnp.allclose(out2, ref2, atol=2e-3, rtol=2e-3), "mismatch (test 2)"

    # --- Test 3: bf16 activations + weights, f32 MXU accumulation -------------
    out3 = jax.block_until_ready(
        t5_dense_gated_act_dense(x.astype(jnp.bfloat16), wi_0, wi_1, wo,
                                 param_dtype=jnp.bfloat16))
    assert out3.dtype == jnp.bfloat16
    assert jnp.allclose(out3.astype(jnp.float32), ref, atol=0.3, rtol=0.1), \
        "mismatch (test 3, bf16)"

    print("KERNEL_OK")
</pallas_src>

<mosaic_0001>
module attributes {stable_mosaic.version = 11 : i64} {
  func.func @_ffn_kernel(%arg0: i32, %arg1: i32, %arg2: memref<16x32xf32, #tpu.memory_space<vmem>>, %arg3: memref<32x128xf32, #tpu.memory_space<vmem>>, %arg4: memref<64x32xf32, #tpu.memory_space<vmem>>, %arg5: memref<16x32xf32, #tpu.memory_space<vmem>>, %arg6: memref<16x32xf32, #tpu.memory_space<vmem>>) attributes {dimension_semantics = [#tpu.dimension_semantics<parallel>, #tpu.dimension_semantics<arbitrary>], iteration_bounds = array<i64: 1, 1>, scalar_prefetch = 0 : i64, scratch_operands = 1 : i64, tpu.core_type = #tpu.core_type<tc>, window_params = [{transform_indices = @transform_0, window_bounds = array<i64: 16, 32>}, {transform_indices = @transform_1, window_bounds = array<i64: 32, 128>}, {transform_indices = @transform_2, window_bounds = array<i64: 64, 32>}, {transform_indices = @transform_3, window_bounds = array<i64: 16, 32>}]} {
    %c0_i32 = arith.constant 0 : i32
    %0 = arith.cmpi eq, %arg1, %c0_i32 : i32
    %1 = arith.extui %0 : i1 to i32
    %c0_i32_0 = arith.constant 0 : i32
    %2 = arith.cmpi ne, %1, %c0_i32_0 : i32
    scf.if %2 {
      %cst_17 = arith.constant 0.000000e+00 : f32
      %30 = vector.broadcast %cst_17 : f32 to vector<16x32xf32>
      %c0_18 = arith.constant 0 : index
      %c0_19 = arith.constant 0 : index
      %31 = vector.load %arg6[%c0_18, %c0_19] : memref<16x32xf32, #tpu.memory_space<vmem>>, vector<16x32xf32>
      tpu.vector_store %arg6[%c0_18, %c0_19], %30 {strides = array<i32>} : memref<16x32xf32, #tpu.memory_space<vmem>>, vector<16x32xf32>,
    } else {
    }
    %c0 = arith.constant 0 : index
    %c0_1 = arith.constant 0 : index
    %3 = vector.load %arg2[%c0, %c0_1] : memref<16x32xf32, #tpu.memory_space<vmem>>, vector<16x32xf32>
    %c0_2 = arith.constant 0 : index
    %c0_3 = arith.constant 0 : index
    %4 = vector.load %arg3[%c0_2, %c0_3] : memref<32x128xf32, #tpu.memory_space<vmem>>, vector<32x128xf32>
    %cst = arith.constant dense<0.000000e+00> : vector<16x128xf32>
    %5 = tpu.matmul %3, %4, %cst {dimension_numbers = #tpu.dot_dimension_numbers<[1], [0], [0], [1], [0, 0, 1, 1], [], []>} : vector<16x32xf32>, vector<32x128xf32>, vector<16x128xf32> -> vector<16x128xf32>
    %6 = vector.extract_strided_slice %5 {offsets = [0, 0], sizes = [16, 64], strides = [1, 1]} : vector<16x128xf32> to vector<16x64xf32>
    %7 = vector.extract_strided_slice %5 {offsets = [0, 64], sizes = [16, 64], strides = [1, 1]} : vector<16x128xf32> to vector<16x64xf32>
    %8 = arith.mulf %6, %6 : vector<16x64xf32>
    %9 = arith.mulf %8, %6 : vector<16x64xf32>
    %cst_4 = arith.constant 5.000000e-01 : f32
    %10 = vector.broadcast %cst_4 : f32 to vector<16x64xf32>
    %11 = arith.mulf %10, %6 : vector<16x64xf32>
    %cst_5 = arith.constant 4.471500e-02 : f32
    %12 = vector.broadcast %cst_5 : f32 to vector<16x64xf32>
    %13 = arith.mulf %12, %9 : vector<16x64xf32>
    %14 = arith.addf %6, %13 : vector<16x64xf32>
    %cst_6 = arith.constant 0.797884583 : f32
    %15 = vector.broadcast %cst_6 : f32 to vector<16x64xf32>
    %16 = arith.mulf %15, %14 : vector<16x64xf32>
    %17 = math.tanh %16 : vector<16x64xf32>
    %cst_7 = arith.constant 1.000000e+00 : f32
    %18 = vector.broadcast %cst_7 : f32 to vector<16x64xf32>
    %19 = arith.addf %18, %17 : vector<16x64xf32>
    %20 = arith.mulf %11, %19 : vector<16x64xf32>
    %21 = arith.mulf %20, %7 : vector<16x64xf32>
    %c0_8 = arith.constant 0 : index
    %c0_9 = arith.constant 0 : index
    %22 = vector.load %arg6[%c0_8, %c0_9] : memref<16x32xf32, #tpu.memory_space<vmem>>, vector<16x32xf32>
    %c0_10 = arith.constant 0 : index
    %c0_11 = arith.constant 0 : index
    %23 = vector.load %arg4[%c0_10, %c0_11] : memref<64x32xf32, #tpu.memory_space<vmem>>, vector<64x32xf32>
    %cst_12 = arith.constant dense<0.000000e+00> : vector<16x32xf32>
    %24 = tpu.matmul %21, %23, %cst_12 {dimension_numbers = #tpu.dot_dimension_numbers<[1], [0], [0], [1], [0, 0, 1, 1], [], []>} : vector<16x64xf32>, vector<64x32xf32>, vector<16x32xf32> -> vector<16x32xf32>
    %25 = arith.addf %22, %24 : vector<16x32xf32>
    %c0_13 = arith.constant 0 : index
    %c0_14 = arith.constant 0 : index
    %26 = vector.load %arg6[%c0_13, %c0_14] : memref<16x32xf32, #tpu.memory_space<vmem>>, vector<16x32xf32>
    tpu.vector_store %arg6[%c0_13, %c0_14], %25 {strides = array<i32>} : memref<16x32xf32, #tpu.memory_space<vmem>>, vector<16x32xf32>,
    %c0_i32_15 = arith.constant 0 : i32
    %27 = arith.cmpi eq, %arg1, %c0_i32_15 : i32
    %28 = arith.extui %27 : i1 to i32
    %c0_i32_16 = arith.constant 0 : i32
    %29 = arith.cmpi ne, %28, %c0_i32_16 : i32
    scf.if %29 {
      %c0_17 = arith.constant 0 : index
      %c0_18 = arith.constant 0 : index
      %30 = vector.load %arg6[%c0_17, %c0_18] : memref<16x32xf32, #tpu.memory_space<vmem>>, vector<16x32xf32>
      %c0_19 = arith.constant 0 : index
      %c0_20 = arith.constant 0 : index
      %31 = vector.load %arg5[%c0_19, %c0_20] : memref<16x32xf32, #tpu.memory_space<vmem>>, vector<16x32xf32>
      tpu.vector_store %arg5[%c0_19, %c0_20], %30 {strides = array<i32>} : memref<16x32xf32, #tpu.memory_space<vmem>>, vector<16x32xf32>,
    } else {
    }
    return
  }
  func.func @transform_0(%arg0: i32, %arg1: i32) -> (i32, i32) {
    %c0_i32 = arith.constant 0 : i32
    %c0_i32_0 = arith.constant 0 : i32
    return %arg0, %c0_i32 : i32, i32
  }
  func.func @transform_1(%arg0: i32, %arg1: i32) -> (i32, i32) {
    %c0_i32 = arith.constant 0 : i32
    %c0_i32_0 = arith.constant 0 : i32
    return %c0_i32, %arg1 : i32, i32
  }
  func.func @transform_2(%arg0: i32, %arg1: i32) -> (i32, i32) {
    %c0_i32 = arith.constant 0 : i32
    %c0_i32_0 = arith.constant 0 : i32
    return %arg1, %c0_i32 : i32, i32
  }
  func.func @transform_3(%arg0: i32, %arg1: i32) -> (i32, i32) {
    %c0_i32 = arith.constant 0 : i32
    %c0_i32_0 = arith.constant 0 : i32
    return %arg0, %c0_i32 : i32, i32
  }
}

</mosaic_0001>

<bundles_post_ra>
// kernel: tpu_custom_call.1
= control target key start
LH: loop header
LB: loop body
LE: loop exit
PB: predicated region body
PF: predicated region fallthrough
CT: control target
= control target key end

     0   :  { %vm19_vm0 = vcmask 261120   ;;  %s451_s0 = inlined_call_operand.vmem [shape: f32[16,32], index: 0, kind: input, shape index: {}]   ;;  %s452_s1 = inlined_call_operand.vmem [shape: f32[32,128], index: 1, kind: input, shape index: {}]   ;;  %s453_s2 = inlined_call_operand.vmem [shape: f32[64,32], index: 2, kind: input, shape index: {}]   ;;  %s454_s3 = inlined_call_operand.hbm [shape: f32[16,32], index: 3, kind: output, shape index: {}]  }
   0x1   :  { %v24_v0 = vld [vmem:[%s452_s1] sm:$0xff]  ;;  %v25_v1 = vld [vmem:[%s452_s1 + $0x8] sm:$0xff]  ;;  %v26_v2 = vld [vmem:[%s452_s1 + $0x10] sm:$0xff] }
   0x2   :  { %v307_v3 = vpack.c.bf16 %v25_v1, %v24_v0  ;;  %v27_v4 = vld [vmem:[%s452_s1 + $0x18] sm:$0xff]  ;;  %v22_v5 = vld [vmem:[%s451_s0] sm:$0xff] }
   0x3   :  { %v311_v6 = vpack.c.bf16 %v27_v4, %v26_v2  ;;  %285 = vmatprep.mubr.msk.f32.mxu0 %vm19_vm0, %v22_v5 }
   0x4   :  { %8 = vsyncpa [#allocation4], 0  ;;  %308 = vmatprep.subr.bf16.mxu0 %v307_v3  ;;  %v23_v7 = vld [vmem:[%s451_s0 + $0x8] sm:$0xff]  ;;  %v140_v8 = vld [vmem:[%s453_s2] sm:$0xff]  ;;  %v364_v20 = vmov 0.0   ;;  %s365_s11 = smov 64  }
   0x5   :  { %310 = vmatpush3.bf16.msra.mxu0 %v307_v3  ;;  %v141_v9 = vld [vmem:[%s453_s2 + $0x8] sm:$0xff]  ;;  %v142_v10 = vld [vmem:[%s453_s2 + $0x10] sm:$0xff]  ;;  %v143_v12 = vld [vmem:[%s453_s2 + $0x18] sm:$0xff]  ;;  %21 = vst.msk [vmem:[#allocation2 + $0x8] sm:$0xff] %vm19_vm0, %v364_v20  ;;  %vm148_vm1 = vcmask 523264  }
   0x6   :  { %312 = vmatprep.subr.bf16.mxu0 %v311_v6  ;;  %v315_v11 = vpack.c.bf16 %v141_v9, %v140_v8  ;;  %v319_v13 = vpack.c.bf16 %v143_v12, %v142_v10  ;;  %v144_v14 = vld [vmem:[%s453_s2 + $0x20] sm:$0xff]  ;;  %v145_v15 = vld [vmem:[%s453_s2 + $0x28] sm:$0xff]  ;;  %v146_v17 = vld [vmem:[%s453_s2 + $0x30] sm:$0xff]  ;;  %20 = vst.msk [vmem:[#allocation2] sm:$0xff] %vm19_vm0, %v364_v20 }
   0x7   :  { %v323_v16 = vpack.c.bf16 %v145_v15, %v144_v14  ;;  %v147_v18 = vld [vmem:[%s453_s2 + $0x38] sm:$0xff]  ;;  %s366_s2 = smov [#allocation3]  }
   0x8   :  { %316 = vmatprep.subr.bf16.mxu1 %v315_v11  ;;  %v327_v19 = vpack.c.bf16 %v147_v18, %v146_v17  ;;  %s246_s12 = sshll.u32 %s366_s2, 4  ;;  %s247_s12 = int_to_ptr.vmem [resolvable:$true] %s246_s12 }
   0x9   :  { %314 = vmatpush3.bf16.msra.mxu0 %v311_v6  ;;  %318 = vmatpush3.bf16.msra.mxu1 %v315_v11  ;;  %s340_s13 = scalar_lea.vmem %s247_s12, 256  ;;  %p345_p1 = scmp.lt.s32.totalorder %s247_s12, %s247_s12 }
   0xa   :  { %320 = vmatprep.subr.bf16.mxu1 %v319_v13  ;;  %p341_p0 = scmp.ne.s32.totalorder %s247_s12, %s340_s13  ;;  %p346_p2 = scmp.lt.s32.totalorder %s340_s13, %s340_s13 }
   0xc   :  { %286 = vmatmul.mubr.msk.f32.vlgmr.msra.gmra.mrb[0].mxu0 %vm19_vm0, %v23_v7  ;;  %v139_v45 = vld [vmem:[#allocation2 + $0x8] sm:$0xff]  ;;  %p347_p3 = por %p346_p2, %p345_p1 }
   0xd   :  { %322 = vmatpush3.bf16.msra.mxu1 %v319_v13  ;;  %v138_v46 = vld [vmem:[#allocation2] sm:$0xff] }
   0xe   :  { %324 = vmatprep.subr.bf16.mxu1 %v323_v16  ;;  %p348_p4 = pnand %p347_p3, %p341_p0 }
  0x11   :  { %326 = vmatpush3.bf16.msra.mxu1 %v323_v16 }
  0x12   :  { %328 = vmatprep.subr.bf16.mxu1 %v327_v19 }
  0x15   :  { %330 = vmatpush3.bf16.msra.mxu1 %v327_v19 }
  0xdf   :  { %v287_v21 = vpop.f32.mrb[0].mxu0 }
  0xe0   :  { %v101_v22 = vpop.f32.mrb[1].mxu0  ;;  %v111_v24 = vmul.f32 %v287_v21, %v287_v21  ;;  %v115_v41 = vmul.f32 0.5, %v287_v21 }
  0xe1   :  { %130 = vrot.lane.b32.xlu0 %v101_v22, %s365_s11  ;;  %v110_v23 = vmul.f32 %v101_v22, %v101_v22  ;;  %v114_v36 = vmul.f32 0.5, %v101_v22 }
  0xe2   :  { %v113_v26 = vmul.f32 %v287_v21, %v111_v24 }
  0xe3   :  { %v112_v25 = vmul.f32 %v110_v23, %v101_v22 }
  0xe4   :  { %v117_v28 = vmul.f32 0.044715, %v113_v26 }
  0xe5   :  { %132 = vrot.lane.b32.xlu0 %v287_v21, %s365_s11  ;;  %v116_v27 = vmul.f32 0.044715, %v112_v25 }
  0xe6   :  { %v119_v31 = vadd.f32 %v287_v21, %v117_v28 }
  0xe7   :  { %v118_v29 = vadd.f32 %v116_v27, %v101_v22 }
  0xe8   :  { %v121_v32 = vmul.f32 0.7978846, %v119_v31 }
  0xe9   :  { %v120_v30 = vmul.f32 0.7978846, %v118_v29 }
  0xeb   :  { %336 = vtanh.f32 %v120_v30 }
  0xec   :  { %338 = vtanh.f32 %v121_v32 }
  0xf5   :  { %v337_v33 = vpop.eup %336 }
  0xf6   :  { %v124_v34 = vadd.f32 1.0, %v337_v33  ;;  %v339_v35 = vpop.eup %338 }
  0xf7   :  { %v125_v38 = vadd.f32 1.0, %v339_v35 }
  0xf8   :  { %v126_v37 = vmul.f32 %v124_v34, %v114_v36 }
  0xf9   :  { %v127_v42 = vmul.f32 %v125_v38, %v115_v41 }
 0x153   :  { %v131_v39 = vpop.permute.xlu0 %130 }
 0x154   :  { %v136_v40 = vmul.f32 %v131_v39, %v126_v37 }
 0x156   :  { %304 = vmatprep.mubr.msk.f32.mxu1 %vm148_vm1, %v136_v40 }
 0x157   :  { %v133_v43 = vpop.permute.xlu0 %132 }
 0x158   :  { %v137_v44 = vmul.f32 %v133_v43, %v127_v42 }
 0x15a   :  { %305 = vmatmul.mubr.msk.f32.vlgmr.msra.gmra.mrb[0].mxu1 %vm148_vm1, %v137_v44 }
 0x22d   :  { %v306_v47 = vpop.f32.mrb[0].mxu1 }
 0x22e   :  { %v231_v48 = vadd.f32 %v306_v47, %v139_v45  ;;  %v221_v49 = vpop.f32.mrb[1].mxu1 }
 0x22f   :  { %v230_v50 = vadd.f32 %v221_v49, %v138_v46 }
 0x230   :  { %233 = vst.msk [vmem:[#allocation2 + $0x8] sm:$0xff] %vm19_vm0, %v231_v48 }
 0x231   :  { %232 = vst.msk [vmem:[#allocation2] sm:$0xff] %vm19_vm0, %v230_v50 }
 0x237   :  { %v238_v51 = vld [vmem:[#allocation2 + $0x8] sm:$0xff] }
 0x238   :  { %v237_v52 = vld [vmem:[#allocation2] sm:$0xff]  ;;  %240 = vst.msk [vmem:[#allocation3 + $0x8] sm:$0xff] %vm19_vm0, %v238_v51 }
 0x239   :  { %239 = vst.msk [vmem:[#allocation3] sm:$0xff] %vm19_vm0, %v237_v52 }
 0x23a   :  { %351 = shalt.err (!%p348_p4)
}
 0x23b   :  { %s352_s16 = scalar_lea.hbm %s454_s3, 256 }
 0x23c   :  { %p353_p5 = scmp.ne.s32.totalorder %s454_s3, %s352_s16  ;;  %p356_p6 = scmp.lt.u32.totalorder %s352_s16, %s454_s3 }
 0x23e   :  { %p358_p7 = pnand %p356_p6, %p353_p5 }
 0x240   :  { %361 = shalt.err (!%p358_p7)
}
 0x241   :  { %s367_s21 = smov 128   ;;  %s368_s22 = smov 8  }
 0x242   :  { %252 = dma.vmem_to_hbm [thread:$0]  %s247_s12, 256, %s454_s3, [#allocation4], %s367_s21, %s367_s21, %s368_s22  }
 0x243   :  { %362 = dma.done.wait [#allocation4], 256  }
 0x244   :  { %363 = vsyncadd [#allocation4], 4294967040 }
 0x245   :  { %256 = vsyncpa [#allocation4], 1 }

</bundles_post_ra>
